<compile_context>
chip_gen: v7x
topology: tpu7x:2x2x1
jax: 0.10.0
libtpu: 0.0.40
codegen_flags: <defaults>
</compile_context>

<pallas_src>
import functools

import jax
import jax.numpy as jnp
import numpy as np
from jax.experimental import pallas as pl
from jax.experimental.pallas import tpu as pltpu


# ------------------------------- kernel --------------------------------------
def _layer_norm_out_kernel(var_ref, res_ref, out_ref, *, eps, exclude_final_dim):
    x = res_ref[...].astype(jnp.float32)          # (tile_rows, D)
    v = var_ref[...].astype(jnp.float32)          # (tile_rows, 1)
    inv_scale = jax.lax.rsqrt(jnp.maximum(v, 0.0) + eps)

    d = x.shape[-1]
    if exclude_final_dim:
        # Mean over the first d-1 features; final feature passes through.
        lane = jax.lax.broadcasted_iota(jnp.int32, x.shape, dimension=1)
        keep = lane < (d - 1)
        mean = jnp.sum(jnp.where(keep, x, 0.0), axis=-1, keepdims=True) / (d - 1)
        normed = (x - mean) * inv_scale
        out = jnp.where(keep, normed, x)
    else:
        mean = jnp.mean(x, axis=-1, keepdims=True)
        out = (x - mean) * inv_scale

    out_ref[...] = out.astype(out_ref.dtype)


# ------------------------------- wrapper --------------------------------------
def _round_up(n, m):
    return ((n + m - 1) // m) * m


@functools.partial(
    jax.jit,
    static_argnames=("eps", "exclude_final_dim", "return_residual", "tile_rows"),
)
def layer_norm_out(var, residual, *, eps=1e-5, exclude_final_dim=False,
                   return_residual=False, tile_rows=256):
    """var: (..., 1) pre-computed variance; residual: (..., d_model)."""
    *lead, D = residual.shape
    rows = int(np.prod(lead)) if lead else 1

    var2 = var.reshape(rows, 1)
    res2 = residual.reshape(rows, D)

    # Large row tiles (multiple of 8 sublanes), padded so any batch*seq works.
    block_rows = min(int(tile_rows), _round_up(rows, 8))
    rows_pad = _round_up(rows, block_rows)
    if rows_pad != rows:
        res2 = jnp.pad(res2, ((0, rows_pad - rows), (0, 0)))
        var2 = jnp.pad(var2, ((0, rows_pad - rows), (0, 0)), constant_values=1.0)

    grid = (rows_pad // block_rows,)

    # Double-buffered in/out row tiles; give the compiler explicit headroom
    # (capped well below v7x's 64 MiB physical VMEM).
    itemsize = max(jnp.dtype(residual.dtype).itemsize, 4)
    per_step = block_rows * (2 * D + 1) * itemsize
    vmem_limit = int(min(max(4 * per_step + (2 << 20), 16 << 20), 48 << 20))

    kernel = functools.partial(
        _layer_norm_out_kernel,
        eps=float(eps),
        exclude_final_dim=bool(exclude_final_dim),
    )

    out2 = pl.pallas_call(
        kernel,
        grid=grid,
        in_specs=[
            pl.BlockSpec((block_rows, 1), lambda i: (i, 0)),   # var
            pl.BlockSpec((block_rows, D), lambda i: (i, 0)),   # residual
        ],
        out_specs=pl.BlockSpec((block_rows, D), lambda i: (i, 0)),
        out_shape=jax.ShapeDtypeStruct((rows_pad, D), residual.dtype),
        compiler_params=pltpu.CompilerParams(
            dimension_semantics=("parallel",),
            vmem_limit_bytes=vmem_limit,
        ),
    )(var2, res2)

    out = out2[:rows].reshape(residual.shape)
    if return_residual:
        # Pure passthrough: no kernel copy needed.
        return out, residual
    return out


# ------------------------- pure-JAX reference ---------------------------------
def reference_layer_norm_out(var, residual, eps, exclude_final_dim=False,
                             return_residual=False):
    var = jnp.maximum(var, 0.0)
    rn = residual[..., :-1] if exclude_final_dim else residual
    out = (rn - rn.mean(-1, keepdims=True)) / jnp.sqrt(var + eps)
    if exclude_final_dim:
        out = jnp.concatenate([out, residual[..., -1:]], axis=-1)
    if return_residual:
        return out, residual
    return out


# --------------------------------- main ----------------------------------------
if __name__ == "__main__":
    # Small synthetic config consistent with the module: batch=2, seq=8, d_model=32.
    B, P, D = 2, 8, 32
    eps = 1e-5

    key = jax.random.PRNGKey(0)
    k1, _ = jax.random.split(key)
    residual = jax.random.normal(k1, (B, P, D), jnp.float32)
    var = jnp.var(residual, axis=-1, keepdims=True)              # (B, P, 1)
    # One negative variance entry to exercise the ReLU(var) edge-ablation path.
    var = var.at[0, 0, 0].set(-0.5)

    for exclude in (False, True):
        out, res_out = layer_norm_out(
            var, residual, eps=eps, exclude_final_dim=exclude,
            return_residual=True, tile_rows=256)
        jax.block_until_ready((out, res_out))

        out_ref, res_ref = reference_layer_norm_out(
            var, residual, eps, exclude_final_dim=exclude, return_residual=True)

        np.testing.assert_allclose(np.asarray(out), np.asarray(out_ref),
                                   rtol=1e-5, atol=1e-5)
        np.testing.assert_allclose(np.asarray(res_out), np.asarray(res_ref),
                                   rtol=1e-6, atol=1e-6)

    print("KERNEL_OK")
</pallas_src>

<mosaic_0001>
module attributes {stable_mosaic.version = 11 : i64} {
  func.func @_layer_norm_out_kernel(%arg0: i32, %arg1: memref<16x1xf32, #tpu.memory_space<vmem>>, %arg2: memref<16x32xf32, #tpu.memory_space<vmem>>, %arg3: memref<16x32xf32, #tpu.memory_space<vmem>>) attributes {dimension_semantics = [#tpu.dimension_semantics<parallel>], iteration_bounds = array<i64: 1>, scalar_prefetch = 0 : i64, scratch_operands = 0 : i64, tpu.core_type = #tpu.core_type<tc>, window_params = [{transform_indices = @transform_0, window_bounds = array<i64: 16, 1>}, {transform_indices = @transform_1, window_bounds = array<i64: 16, 32>}, {transform_indices = @transform_2, window_bounds = array<i64: 16, 32>}]} {
    %c0 = arith.constant 0 : index
    %c0_0 = arith.constant 0 : index
    %0 = vector.load %arg2[%c0, %c0_0] : memref<16x32xf32, #tpu.memory_space<vmem>>, vector<16x32xf32>
    %c0_1 = arith.constant 0 : index
    %c0_2 = arith.constant 0 : index
    %1 = vector.load %arg1[%c0_1, %c0_2] : memref<16x1xf32, #tpu.memory_space<vmem>>, vector<16x1xf32>
    %cst = arith.constant 0.000000e+00 : f32
    %2 = vector.broadcast %cst : f32 to vector<16x1xf32>
    %3 = arith.maximumf %1, %2 : vector<16x1xf32>
    %cst_3 = arith.constant 9.99999974E-6 : f32
    %4 = vector.broadcast %cst_3 : f32 to vector<16x1xf32>
    %5 = arith.addf %3, %4 : vector<16x1xf32>
    %6 = math.rsqrt %5 : vector<16x1xf32>
    %cst_4 = arith.constant dense<0.000000e+00> : vector<16xf32>
    %7 = vector.multi_reduction <add>, %0, %cst_4 [1] : vector<16x32xf32> to vector<16xf32>
    %8 = vector.shape_cast %7 : vector<16xf32> to vector<16x1xf32>
    %cst_5 = arith.constant 3.200000e+01 : f32
    %9 = vector.broadcast %cst_5 : f32 to vector<16x1xf32>
    %10 = arith.divf %8, %9 : vector<16x1xf32>
    %11 = vector.broadcast %10 : vector<16x1xf32> to vector<16x32xf32>
    %12 = arith.subf %0, %11 : vector<16x32xf32>
    %13 = vector.broadcast %6 : vector<16x1xf32> to vector<16x32xf32>
    %14 = arith.mulf %12, %13 : vector<16x32xf32>
    %c0_6 = arith.constant 0 : index
    %c0_7 = arith.constant 0 : index
    %15 = vector.load %arg3[%c0_6, %c0_7] : memref<16x32xf32, #tpu.memory_space<vmem>>, vector<16x32xf32>
    tpu.vector_store %arg3[%c0_6, %c0_7], %14 {strides = array<i32>} : memref<16x32xf32, #tpu.memory_space<vmem>>, vector<16x32xf32>,
    return
  }
  func.func @transform_0(%arg0: i32) -> (i32, i32) {
    %c0_i32 = arith.constant 0 : i32
    %c0_i32_0 = arith.constant 0 : i32
    return %arg0, %c0_i32 : i32, i32
  }
  func.func @transform_1(%arg0: i32) -> (i32, i32) {
    %c0_i32 = arith.constant 0 : i32
    %c0_i32_0 = arith.constant 0 : i32
    return %arg0, %c0_i32 : i32, i32
  }
  func.func @transform_2(%arg0: i32) -> (i32, i32) {
    %c0_i32 = arith.constant 0 : i32
    %c0_i32_0 = arith.constant 0 : i32
    return %arg0, %c0_i32 : i32, i32
  }
}

</mosaic_0001>

<bundles_post_ra>
// kernel: layer_norm_out.1
= control target key start
LH: loop header
LB: loop body
LE: loop exit
PB: predicated region body
PF: predicated region fallthrough
CT: control target
= control target key end

     0   :  { %vm22_vm0 = vcmask 261120   ;;  %v98_v4 = vmov 0   ;;  %s145_s0 = inlined_call_operand.vmem [shape: f32[16,1], index: 0, kind: input, shape index: {}]   ;;  %s146_s1 = inlined_call_operand.vmem [shape: f32[16,32], index: 1, kind: input, shape index: {}]   ;;  %s147_s2 = inlined_call_operand.hbm [shape: f32[16,32], index: 2, kind: output, shape index: {}]  }
   0x1   :  { %v12_v0 = vld [vmem:[%s146_s1] sm:$0xff]  ;;  %v13_v1 = vld [vmem:[%s146_s1 + $0x8] sm:$0xff]  ;;  %68 = vset.pattern.permute.xlu1 %v98_v4  ;;  %69 = vset.pattern.permute.xlu0 %v98_v4 }
   0x2   :  { %v14_v2 = vld [vmem:[%s145_s0] sm:$0xff]  ;;  %v23_v3 = vsel %vm22_vm0, %v12_v0, 0.0  ;;  %v15_v6 = vld [vmem:[%s145_s0 + $0x8] sm:$0xff] }
   0x3   :  { %v16_v5 = vmax.f32 %v14_v2, 0.0 }
   0x4   :  { %7 = vsyncpa [#allocation3], 0  ;;  %24 = vadd.xlane.f32.xlu0 %v23_v3  ;;  %v17_v7 = vmax.f32 %v15_v6, 0.0  ;;  %v26_v8 = vsel %vm22_vm0, %v13_v1, 0.0  ;;  %s99_s0 = smov [#allocation2]  }
   0x5   :  { %v18_v9 = vadd.f32 1e-05, %v16_v5  ;;  %s53_s1 = sshll.u32 %s99_s0, 4  ;;  %s54_s1 = int_to_ptr.vmem [resolvable:$true] %s53_s1 }
   0x6   :  { %v19_v10 = vadd.f32 1e-05, %v17_v7  ;;  %s74_s17 = scalar_lea.vmem %s54_s1, 256  ;;  %p79_p1 = scmp.lt.s32.totalorder %s54_s1, %s54_s1 }
   0x7   :  { %70 = vrsqrt.f32 %v18_v9  ;;  %p75_p0 = scmp.ne.s32.totalorder %s54_s1, %s74_s17  ;;  %p80_p2 = scmp.lt.s32.totalorder %s74_s17, %s74_s17 }
   0x8   :  { %27 = vadd.xlane.f32.xlu0 %v26_v8  ;;  %72 = vrsqrt.f32 %v19_v10 }
   0x9   :  { %p81_p3 = por %p80_p2, %p79_p1 }
   0xb   :  { %p82_p4 = pnand %p81_p3, %p75_p0 }
  0x11   :  { %v71_v11 = vpop.eup %70 }
  0x12   :  { %36 = vperm.xlu1 %68, %v71_v11   ;;  %v73_v12 = vpop.eup %72 }
  0x16   :  { %41 = vperm.xlu1 %68, %v73_v12  }
  0x91   :  { %v25_v13 = vpop.xlane.xlu0 %24  ;;  %v37_v15 = vpop.permute.xlu1 %36 }
  0x92   :  { %v30_v14 = vmul.f32 0.03125, %v25_v13 }
  0x94   :  { %v32_v16 = vsub.f32 %v12_v0, %v30_v14 }
  0x95   :  { %v28_v17 = vpop.xlane.xlu0 %27  ;;  %v42_v21 = vpop.permute.xlu1 %41 }
  0x96   :  { %v44_v18 = vmul.f32 %v37_v15, %v32_v16  ;;  %v31_v19 = vmul.f32 0.03125, %v28_v17 }
  0x98   :  { %46 = vst.msk [vmem:[#allocation2] sm:$0xff] %vm22_vm0, %v44_v18  ;;  %v33_v20 = vsub.f32 %v13_v1, %v31_v19 }
  0x9a   :  { %v45_v22 = vmul.f32 %v42_v21, %v33_v20 }
  0x9c   :  { %47 = vst.msk [vmem:[#allocation2 + $0x8] sm:$0xff] %vm22_vm0, %v45_v22 }
  0x9d   :  { %85 = shalt.err (!%p82_p4)
}
  0x9e   :  { %s86_s20 = scalar_lea.hbm %s147_s2, 256 }
  0x9f   :  { %p87_p5 = scmp.ne.s32.totalorder %s147_s2, %s86_s20  ;;  %p90_p6 = scmp.lt.u32.totalorder %s86_s20, %s147_s2 }
  0xa1   :  { %p92_p7 = pnand %p90_p6, %p87_p5 }
  0xa3   :  { %95 = shalt.err (!%p92_p7)
}
  0xa4   :  { %s100_s25 = smov 128   ;;  %s101_s26 = smov 8  }
  0xa5   :  { %59 = dma.vmem_to_hbm [thread:$0]  %s54_s1, 256, %s147_s2, [#allocation3], %s100_s25, %s100_s25, %s101_s26  }
  0xa6   :  { %96 = dma.done.wait [#allocation3], 256  }
  0xa7   :  { %97 = vsyncadd [#allocation3], 4294967040 }
  0xa8   :  { %63 = vsyncpa [#allocation3], 1 }

</bundles_post_ra>
